<compile_context>
chip_gen: v6e
topology: v6e:2x2x1
jax: 0.10.0
libtpu: 0.0.40
codegen_flags: <defaults>
</compile_context>

<pallas_src>
import jax
import jax.numpy as jnp
from jax.experimental import pallas as pl
from jax.experimental.pallas import tpu as pltpu

LANE = 128
SUBLANE = 8


def _round_up(x, m):
    return ((x + m - 1) // m) * m


def _leaky_relu(v, slope=0.1):
    # slope 0.1 is intentional: the reference module uses F.leaky_relu(x, 0.1)
    return jnp.where(v > 0, v, slope * v)


def dqn_kernel(x_ref,
               w1_ref, b1_ref,
               w2_ref, b2_ref,
               w3_ref, b3_ref,
               w4_ref, b4_ref,
               o_ref):
    # Four MXU matmuls on bf16 operands with f32 accumulation; all elementwise
    # work (bias add, LeakyReLU) stays in f32 on the VPU.
    x = x_ref[...].astype(jnp.bfloat16)                      # [TILE_B, in]
    h1 = _leaky_relu(
        jnp.dot(x, w1_ref[...], preferred_element_type=jnp.float32)
        + b1_ref[...])
    h2 = _leaky_relu(
        jnp.dot(h1.astype(jnp.bfloat16), w2_ref[...],
                preferred_element_type=jnp.float32) + b2_ref[...])
    h3 = _leaky_relu(
        jnp.dot(h2.astype(jnp.bfloat16), w3_ref[...],
                preferred_element_type=jnp.float32) + b3_ref[...])
    h4 = _leaky_relu(
        jnp.dot(h3.astype(jnp.bfloat16), w4_ref[...],
                preferred_element_type=jnp.float32) + b4_ref[...])
    o_ref[...] = h4.astype(o_ref.dtype)                      # lane-dense store


def dqn_forward(x, params, *, tile_b_max=256):
    """x: [B, input_size] f32; params: dict of [in,out] weights / [1,out] biases.

    Returns [B, output_size] f32.
    """
    B, input_size = x.shape
    output_size = params["w4"].shape[1]
    out_pad = _round_up(output_size, LANE)       # lane-dense output (128 cols)

    # Batch tiling: multiple of 8 sublanes, capped to avoid vreg spills.
    tile_b = min(tile_b_max, _round_up(B, SUBLANE))
    b_pad = _round_up(B, tile_b)

    x_p = x if b_pad == B else jnp.pad(x, ((0, b_pad - B), (0, 0)))

    # MXU operands in bf16 (one-time tiny wrapper cast, weights are VMEM
    # resident); biases stay f32 for the VPU path.
    w = {i: params[f"w{i}"].astype(jnp.bfloat16) for i in range(1, 5)}
    b = {i: params[f"b{i}"] for i in range(1, 5)}
    w[4] = jnp.pad(w[4], ((0, 0), (0, out_pad - output_size)))
    b[4] = jnp.pad(b[4], ((0, 0), (0, out_pad - output_size)))

    grid = (b_pad // tile_b,)

    def resident(shape):
        # Constant block index -> stays VMEM-resident, no re-DMA across steps.
        return pl.BlockSpec(shape, lambda i: (0, 0))

    in_specs = [pl.BlockSpec((tile_b, input_size), lambda i: (i, 0))]
    for i in range(1, 5):
        in_specs.append(resident(w[i].shape))
        in_specs.append(resident(b[i].shape))

    flops = 2 * b_pad * (input_size * 128 + 128 * 64 + 64 * 32 + 32 * out_pad)
    bytes_accessed = (
        x_p.size * 4
        + sum(w[i].size * 2 + b[i].size * 4 for i in range(1, 5))
        + b_pad * out_pad * 4)

    out = pl.pallas_call(
        dqn_kernel,
        out_shape=jax.ShapeDtypeStruct((b_pad, out_pad), jnp.float32),
        grid=grid,
        in_specs=in_specs,
        out_specs=pl.BlockSpec((tile_b, out_pad), lambda i: (i, 0)),
        compiler_params=pltpu.CompilerParams(
            dimension_semantics=("parallel",)),   # dual-TC sharding on v7x
        cost_estimate=pl.CostEstimate(
            flops=flops, transcendentals=0, bytes_accessed=bytes_accessed),
    )(x_p,
      w[1], b[1], w[2], b[2], w[3], b[3], w[4], b[4])

    return out[:B, :output_size]


def init_params(key, input_size, output_size):
    """Deterministic init; weights stored already transposed to [in, out]."""
    dims = [(input_size, 128), (128, 64), (64, 32), (32, output_size)]
    params = {}
    for i, (fan_in, fan_out) in enumerate(dims, start=1):
        key, kw, kb = jax.random.split(key, 3)
        bound = 1.0 / jnp.sqrt(jnp.float32(fan_in))  # PyTorch Linear init range
        params[f"w{i}"] = jax.random.uniform(
            kw, (fan_in, fan_out), jnp.float32, -bound, bound)
        params[f"b{i}"] = jax.random.uniform(
            kb, (1, fan_out), jnp.float32, -bound, bound)
    return params


def dqn_reference(x, params):
    """Pure-JAX f32 reference for correctness check."""
    h = x
    for i in range(1, 5):
        h = h @ params[f"w{i}"] + params[f"b{i}"]
        h = jnp.where(h > 0, h, 0.1 * h)
    return h


if __name__ == "__main__":
    input_size = 8
    output_size = 4
    batch = 2

    key = jax.random.PRNGKey(0)
    key, kx = jax.random.split(key)
    x = jax.random.normal(kx, (batch, input_size), jnp.float32)
    params = init_params(key, input_size, output_size)

    out = jax.block_until_ready(dqn_forward(x, params))
    ref = dqn_reference(x, params)

    assert out.shape == (batch, output_size)
    # bf16 MXU operands with f32 accumulation -> loosened tolerance vs f32 ref.
    assert jnp.allclose(out, ref, atol=3e-2, rtol=3e-2), (
        float(jnp.max(jnp.abs(out - ref))))

    print("KERNEL_OK")
</pallas_src>

<mosaic_0001>
module attributes {stable_mosaic.version = 11 : i64} {
  func.func @dqn_kernel(%arg0: i32, %arg1: memref<8x8xf32, #tpu.memory_space<vmem>>, %arg2: memref<8x128xbf16, #tpu.memory_space<vmem>>, %arg3: memref<1x128xf32, #tpu.memory_space<vmem>>, %arg4: memref<128x64xbf16, #tpu.memory_space<vmem>>, %arg5: memref<1x64xf32, #tpu.memory_space<vmem>>, %arg6: memref<64x32xbf16, #tpu.memory_space<vmem>>, %arg7: memref<1x32xf32, #tpu.memory_space<vmem>>, %arg8: memref<32x128xbf16, #tpu.memory_space<vmem>>, %arg9: memref<1x128xf32, #tpu.memory_space<vmem>>, %arg10: memref<8x128xf32, #tpu.memory_space<vmem>>) attributes {dimension_semantics = [#tpu.dimension_semantics<parallel>], iteration_bounds = array<i64: 1>, scalar_prefetch = 0 : i64, scratch_operands = 0 : i64, tpu.core_type = #tpu.core_type<tc>, window_params = [{transform_indices = @transform_0, window_bounds = array<i64: 8, 8>}, {pipeline_mode = #tpu.pipeline_mode<synchronous>, transform_indices = @transform_1, window_bounds = array<i64: 8, 128>}, {pipeline_mode = #tpu.pipeline_mode<synchronous>, transform_indices = @transform_2, window_bounds = array<i64: 1, 128>}, {pipeline_mode = #tpu.pipeline_mode<synchronous>, transform_indices = @transform_3, window_bounds = array<i64: 128, 64>}, {pipeline_mode = #tpu.pipeline_mode<synchronous>, transform_indices = @transform_4, window_bounds = array<i64: 1, 64>}, {pipeline_mode = #tpu.pipeline_mode<synchronous>, transform_indices = @transform_5, window_bounds = array<i64: 64, 32>}, {pipeline_mode = #tpu.pipeline_mode<synchronous>, transform_indices = @transform_6, window_bounds = array<i64: 1, 32>}, {pipeline_mode = #tpu.pipeline_mode<synchronous>, transform_indices = @transform_7, window_bounds = array<i64: 32, 128>}, {pipeline_mode = #tpu.pipeline_mode<synchronous>, transform_indices = @transform_8, window_bounds = array<i64: 1, 128>}, {transform_indices = @transform_9, window_bounds = array<i64: 8, 128>}]} {
    %c0 = arith.constant 0 : index
    %c0_0 = arith.constant 0 : index
    %0 = vector.load %arg1[%c0, %c0_0] : memref<8x8xf32, #tpu.memory_space<vmem>>, vector<8x8xf32>
    %1 = arith.truncf %0 : vector<8x8xf32> to vector<8x8xbf16>
    %c0_1 = arith.constant 0 : index
    %c0_2 = arith.constant 0 : index
    %2 = vector.load %arg2[%c0_1, %c0_2] : memref<8x128xbf16, #tpu.memory_space<vmem>>, vector<8x128xbf16>
    %cst = arith.constant dense<0.000000e+00> : vector<8x128xf32>
    %3 = tpu.matmul %1, %2, %cst {dimension_numbers = #tpu.dot_dimension_numbers<[1], [0], [0], [1], [0, 0, 1, 1], [], []>} : vector<8x8xbf16>, vector<8x128xbf16>, vector<8x128xf32> -> vector<8x128xf32>
    %c0_3 = arith.constant 0 : index
    %c0_4 = arith.constant 0 : index
    %4 = vector.load %arg3[%c0_3, %c0_4] : memref<1x128xf32, #tpu.memory_space<vmem>>, vector<1x128xf32>
    %5 = vector.broadcast %4 : vector<1x128xf32> to vector<8x128xf32>
    %6 = arith.addf %3, %5 : vector<8x128xf32>
    %cst_5 = arith.constant 0.000000e+00 : f32
    %7 = vector.broadcast %cst_5 : f32 to vector<8x128xf32>
    %8 = arith.cmpf ogt, %6, %7 : vector<8x128xf32>
    %cst_6 = arith.constant 1.000000e-01 : f32
    %9 = vector.broadcast %cst_6 : f32 to vector<8x128xf32>
    %10 = arith.mulf %9, %6 : vector<8x128xf32>
    %11 = arith.select %8, %6, %10 : vector<8x128xi1>, vector<8x128xf32>
    %12 = arith.truncf %11 : vector<8x128xf32> to vector<8x128xbf16>
    %c0_7 = arith.constant 0 : index
    %c0_8 = arith.constant 0 : index
    %13 = vector.load %arg4[%c0_7, %c0_8] : memref<128x64xbf16, #tpu.memory_space<vmem>>, vector<128x64xbf16>
    %cst_9 = arith.constant dense<0.000000e+00> : vector<8x64xf32>
    %14 = tpu.matmul %12, %13, %cst_9 {dimension_numbers = #tpu.dot_dimension_numbers<[1], [0], [0], [1], [0, 0, 1, 1], [], []>} : vector<8x128xbf16>, vector<128x64xbf16>, vector<8x64xf32> -> vector<8x64xf32>
    %c0_10 = arith.constant 0 : index
    %c0_11 = arith.constant 0 : index
    %15 = vector.load %arg5[%c0_10, %c0_11] : memref<1x64xf32, #tpu.memory_space<vmem>>, vector<1x64xf32>
    %16 = vector.broadcast %15 : vector<1x64xf32> to vector<8x64xf32>
    %17 = arith.addf %14, %16 : vector<8x64xf32>
    %cst_12 = arith.constant 0.000000e+00 : f32
    %18 = vector.broadcast %cst_12 : f32 to vector<8x64xf32>
    %19 = arith.cmpf ogt, %17, %18 : vector<8x64xf32>
    %cst_13 = arith.constant 1.000000e-01 : f32
    %20 = vector.broadcast %cst_13 : f32 to vector<8x64xf32>
    %21 = arith.mulf %20, %17 : vector<8x64xf32>
    %22 = arith.select %19, %17, %21 : vector<8x64xi1>, vector<8x64xf32>
    %23 = arith.truncf %22 : vector<8x64xf32> to vector<8x64xbf16>
    %c0_14 = arith.constant 0 : index
    %c0_15 = arith.constant 0 : index
    %24 = vector.load %arg6[%c0_14, %c0_15] : memref<64x32xbf16, #tpu.memory_space<vmem>>, vector<64x32xbf16>
    %cst_16 = arith.constant dense<0.000000e+00> : vector<8x32xf32>
    %25 = tpu.matmul %23, %24, %cst_16 {dimension_numbers = #tpu.dot_dimension_numbers<[1], [0], [0], [1], [0, 0, 1, 1], [], []>} : vector<8x64xbf16>, vector<64x32xbf16>, vector<8x32xf32> -> vector<8x32xf32>
    %c0_17 = arith.constant 0 : index
    %c0_18 = arith.constant 0 : index
    %26 = vector.load %arg7[%c0_17, %c0_18] : memref<1x32xf32, #tpu.memory_space<vmem>>, vector<1x32xf32>
    %27 = vector.broadcast %26 : vector<1x32xf32> to vector<8x32xf32>
    %28 = arith.addf %25, %27 : vector<8x32xf32>
    %cst_19 = arith.constant 0.000000e+00 : f32
    %29 = vector.broadcast %cst_19 : f32 to vector<8x32xf32>
    %30 = arith.cmpf ogt, %28, %29 : vector<8x32xf32>
    %cst_20 = arith.constant 1.000000e-01 : f32
    %31 = vector.broadcast %cst_20 : f32 to vector<8x32xf32>
    %32 = arith.mulf %31, %28 : vector<8x32xf32>
    %33 = arith.select %30, %28, %32 : vector<8x32xi1>, vector<8x32xf32>
    %34 = arith.truncf %33 : vector<8x32xf32> to vector<8x32xbf16>
    %c0_21 = arith.constant 0 : index
    %c0_22 = arith.constant 0 : index
    %35 = vector.load %arg8[%c0_21, %c0_22] : memref<32x128xbf16, #tpu.memory_space<vmem>>, vector<32x128xbf16>
    %cst_23 = arith.constant dense<0.000000e+00> : vector<8x128xf32>
    %36 = tpu.matmul %34, %35, %cst_23 {dimension_numbers = #tpu.dot_dimension_numbers<[1], [0], [0], [1], [0, 0, 1, 1], [], []>} : vector<8x32xbf16>, vector<32x128xbf16>, vector<8x128xf32> -> vector<8x128xf32>
    %c0_24 = arith.constant 0 : index
    %c0_25 = arith.constant 0 : index
    %37 = vector.load %arg9[%c0_24, %c0_25] : memref<1x128xf32, #tpu.memory_space<vmem>>, vector<1x128xf32>
    %38 = vector.broadcast %37 : vector<1x128xf32> to vector<8x128xf32>
    %39 = arith.addf %36, %38 : vector<8x128xf32>
    %cst_26 = arith.constant 0.000000e+00 : f32
    %40 = vector.broadcast %cst_26 : f32 to vector<8x128xf32>
    %41 = arith.cmpf ogt, %39, %40 : vector<8x128xf32>
    %cst_27 = arith.constant 1.000000e-01 : f32
    %42 = vector.broadcast %cst_27 : f32 to vector<8x128xf32>
    %43 = arith.mulf %42, %39 : vector<8x128xf32>
    %44 = arith.select %41, %39, %43 : vector<8x128xi1>, vector<8x128xf32>
    %c0_28 = arith.constant 0 : index
    %c0_29 = arith.constant 0 : index
    %45 = vector.load %arg10[%c0_28, %c0_29] : memref<8x128xf32, #tpu.memory_space<vmem>>, vector<8x128xf32>
    tpu.vector_store %arg10[%c0_28, %c0_29], %44 {strides = array<i32>} : memref<8x128xf32, #tpu.memory_space<vmem>>, vector<8x128xf32>,
    return
  }
  func.func @transform_0(%arg0: i32) -> (i32, i32) {
    %c0_i32 = arith.constant 0 : i32
    %c0_i32_0 = arith.constant 0 : i32
    return %arg0, %c0_i32 : i32, i32
  }
  func.func @transform_1(%arg0: i32) -> (i32, i32) {
    %c0_i32 = arith.constant 0 : i32
    %c0_i32_0 = arith.constant 0 : i32
    %c0_i32_1 = arith.constant 0 : i32
    return %c0_i32, %c0_i32_0 : i32, i32
  }
  func.func @transform_2(%arg0: i32) -> (i32, i32) {
    %c0_i32 = arith.constant 0 : i32
    %c0_i32_0 = arith.constant 0 : i32
    %c0_i32_1 = arith.constant 0 : i32
    return %c0_i32, %c0_i32_0 : i32, i32
  }
  func.func @transform_3(%arg0: i32) -> (i32, i32) {
    %c0_i32 = arith.constant 0 : i32
    %c0_i32_0 = arith.constant 0 : i32
    %c0_i32_1 = arith.constant 0 : i32
    return %c0_i32, %c0_i32_0 : i32, i32
  }
  func.func @transform_4(%arg0: i32) -> (i32, i32) {
    %c0_i32 = arith.constant 0 : i32
    %c0_i32_0 = arith.constant 0 : i32
    %c0_i32_1 = arith.constant 0 : i32
    return %c0_i32, %c0_i32_0 : i32, i32
  }
  func.func @transform_5(%arg0: i32) -> (i32, i32) {
    %c0_i32 = arith.constant 0 : i32
    %c0_i32_0 = arith.constant 0 : i32
    %c0_i32_1 = arith.constant 0 : i32
    return %c0_i32, %c0_i32_0 : i32, i32
  }
  func.func @transform_6(%arg0: i32) -> (i32, i32) {
    %c0_i32 = arith.constant 0 : i32
    %c0_i32_0 = arith.constant 0 : i32
    %c0_i32_1 = arith.constant 0 : i32
    return %c0_i32, %c0_i32_0 : i32, i32
  }
  func.func @transform_7(%arg0: i32) -> (i32, i32) {
    %c0_i32 = arith.constant 0 : i32
    %c0_i32_0 = arith.constant 0 : i32
    %c0_i32_1 = arith.constant 0 : i32
    return %c0_i32, %c0_i32_0 : i32, i32
  }
  func.func @transform_8(%arg0: i32) -> (i32, i32) {
    %c0_i32 = arith.constant 0 : i32
    %c0_i32_0 = arith.constant 0 : i32
    %c0_i32_1 = arith.constant 0 : i32
    return %c0_i32, %c0_i32_0 : i32, i32
  }
  func.func @transform_9(%arg0: i32) -> (i32, i32) {
    %c0_i32 = arith.constant 0 : i32
    %c0_i32_0 = arith.constant 0 : i32
    return %arg0, %c0_i32 : i32, i32
  }
}

</mosaic_0001>

<bundles_post_ra>
// kernel: tpu_custom_call.1
= control target key start
LH: loop header
LB: loop body
LE: loop exit
PB: predicated region body
PF: predicated region fallthrough
CT: control target
= control target key end

     0   :  { %vm48_vm0 = vcmask 1043456   ;;  %v508_v2 = vmov 0.0   ;;  %vm509_vm1 = vmmov 0   ;;  %vm44_vm2 = vcmask 64512   ;;  %s647_s0 = inlined_call_operand.vmem [shape: f32[8,8], index: 0, kind: input, shape index: {}]   ;;  %s648_s1 = inlined_call_operand.vmem [shape: bf16[8,128], index: 1, kind: input, shape index: {}]   ;;  %s649_s2 = inlined_call_operand.vmem [shape: f32[1,128], index: 2, kind: input, shape index: {}]   ;;  %s650_s3 = inlined_call_operand.vmem [shape: bf16[128,64], index: 3, kind: input, shape index: {}]   ;;  %s651_s4 = inlined_call_operand.vmem [shape: f32[1,64], index: 4, kind: input, shape index: {}]   ;;  %s652_s5 = inlined_call_operand.vmem [shape: bf16[64,32], index: 5, kind: input, shape index: {}]   ;;  %s653_s6 = inlined_call_operand.vmem [shape: f32[1,32], index: 6, kind: input, shape index: {}]   ;;  %s654_s7 = inlined_call_operand.vmem [shape: bf16[32,128], index: 7, kind: input, shape index: {}]   ;;  %s655_s8 = inlined_call_operand.vmem [shape: f32[1,128], index: 8, kind: input, shape index: {}]   ;;  %s656_s9 = inlined_call_operand.hbm [shape: f32[8,128], index: 9, kind: output, shape index: {}]  }
   0x1   :  { %v36_v0 = vld [vmem:[%s648_s1] sm:$0xf]  ;;  %423 = vmatprep.subr.bf16.mxu0 %v508_v2  ;;  %425 = vmatprep.mubr.msk.bf16.mxu0 %vm509_vm1, %v508_v2  ;;  %v472_v5 = vld [vmem:[%s650_s3 + $0x38] sm:$0xff]   ;;  %v473_v6 = vld [vmem:[%s650_s3 + $0x30] sm:$0xff]  }
   0x2   :  { %v34_v1 = vld [vmem:[%s647_s0] sm:$0xff]  ;;  %v50_v3 = vsel %vm48_vm0, %v36_v0, 0  ;;  %429 = vmatprep.subr.bf16.mxu1 %v508_v2  ;;  %445 = vmatprep.mubr.msk.bf16.mxu1 %vm509_vm1, %v508_v2  ;;  %v474_v7 = vld [vmem:[%s650_s3 + $0x28] sm:$0xff]  }
   0x3   :  { %v35_v4 = vpack.c.bf16 %v34_v1, %v34_v1  ;;  %424 = vmatpush3.bf16.msra.mxu0 %v50_v3  ;;  %430 = vmatpush3.bf16.msra.mxu1 %v472_v5  ;;  %v475_v8 = vld [vmem:[%s650_s3 + $0x20] sm:$0xff]  }
   0x4   :  { %449 = vmatprep.subr.bf16.mxu0 %v508_v2  ;;  %431 = vmatprep.subr.bf16.mxu1 %v508_v2 }
   0x6   :  { %426 = vmatmul.mubr.msk.bf16.vlgmr.msra.gmra.mxu0 %vm44_vm2, %v35_v4 }
   0x7   :  { %457 = vmatprep.mubr.msk.bf16.mxu0 %vm509_vm1, %v508_v2  ;;  %432 = vmatpush3.bf16.msra.mxu1 %v473_v6 }
   0x8   :  { %433 = vmatprep.subr.bf16.mxu1 %v508_v2 }
   0xb   :  { %434 = vmatpush3.bf16.msra.mxu1 %v474_v7 }
   0xc   :  { %435 = vmatprep.subr.bf16.mxu1 %v508_v2 }
   0xd   :  { %14 = vsyncpa [#allocation3], 0  ;;  %v476_v9 = vld [vmem:[%s650_s3 + $0x18] sm:$0xff]   ;;  %v477_v10 = vld [vmem:[%s650_s3 + $0x10] sm:$0xff]   ;;  %vm250_vm5 = vcmask 523264   ;;  %vm321_vm7 = vcmask 261120  }
   0xe   :  { %v478_v11 = vld [vmem:[%s650_s3 + $0x8] sm:$0xff]   ;;  %v479_v12 = vld [vmem:[%s650_s3] sm:$0xff]   ;;  %v480_v13 = vld [vmem:[%s652_s5 + $0x18] sm:$0xff]  }
   0xf   :  { %436 = vmatpush3.bf16.msra.mxu1 %v475_v8  ;;  %450 = vmatpush3.bf16.msra.mxu0 %v480_v13  ;;  %v481_v14 = vld [vmem:[%s652_s5 + $0x10] sm:$0xff]   ;;  %v383_v15 = vld [vmem:[%s649_s2] ss:$0 sm:$0xff]  ;;  %v482_v24 = vld [vmem:[%s652_s5 + $0x8] sm:$0xff]  }
  0x10   :  { %437 = vmatprep.subr.bf16.mxu1 %v508_v2  ;;  %451 = vmatprep.subr.bf16.mxu0 %v508_v2  ;;  %v483_v25 = vld [vmem:[%s652_s5] sm:$0xff]   ;;  %v484_v35 = vld [vmem:[%s654_s7 + $0x8] sm:$0xff]  }
  0x11   :  { %v385_v26 = vld [vmem:[%s651_s4] ss:$0 sm:$0xff] }
  0x12   :  { %v485_v36 = vld [vmem:[%s654_s7] sm:$0xff]   ;;  %s510_s7 = smov [#allocation2]  }
  0x13   :  { %438 = vmatpush3.bf16.msra.mxu1 %v476_v9  ;;  %452 = vmatpush3.bf16.msra.mxu0 %v481_v14  ;;  %v394_v37 = vld [vmem:[%s653_s6] ss:$0 sm:$0xff]  ;;  %s375_s20 = sshll.u32 %s510_s7, 4  ;;  %s376_s20 = int_to_ptr.vmem [resolvable:$true] %s375_s20 }
  0x14   :  { %439 = vmatprep.subr.bf16.mxu1 %v508_v2  ;;  %453 = vmatprep.subr.bf16.mxu0 %v508_v2  ;;  %v400_v46 = vld [vmem:[%s655_s8] ss:$0 sm:$0xff]  ;;  %s486_s6 = scalar_lea.vmem %s376_s20, 128  ;;  %p491_p1 = scmp.lt.s32.totalorder %s376_s20, %s376_s20 }
  0x15   :  { %p487_p0 = scmp.ne.s32.totalorder %s376_s20, %s486_s6  ;;  %p492_p2 = scmp.lt.s32.totalorder %s486_s6, %s486_s6 }
  0x17   :  { %440 = vmatpush3.bf16.msra.mxu1 %v477_v10  ;;  %454 = vmatpush3.bf16.msra.mxu0 %v482_v24  ;;  %p493_p3 = por %p492_p2, %p491_p1 }
  0x18   :  { %441 = vmatprep.subr.bf16.mxu1 %v508_v2  ;;  %455 = vmatprep.subr.bf16.mxu0 %v508_v2 }
  0x19   :  { %p494_p4 = pnand %p493_p3, %p487_p0 }
  0x1b   :  { %442 = vmatpush3.bf16.msra.mxu1 %v478_v11  ;;  %456 = vmatpush3.bf16.msra.mxu0 %v483_v25 }
  0x1c   :  { %443 = vmatprep.subr.bf16.mxu1 %v508_v2  ;;  %461 = vmatprep.subr.bf16.mxu0 %v508_v2 }
  0x1f   :  { %444 = vmatpush3.bf16.msra.mxu1 %v479_v12 }
  0xc6   :  { %v86_v16 = vpop.f32.mrf.mxu0 }
  0xc7   :  { %v87_v17 = vadd.f32 %v383_v15, %v86_v16 }
  0xc8   :  { %v427_v18 = vpop.f32.mrf.mxu0 }
  0xc9   :  { %vm92_vm3 = vcmp.gt.f32.partialorder %v87_v17, 0.0  ;;  %v93_v19 = vmul.f32 0.1, %v87_v17 }
  0xca   :  { %v89_v20 = vpop.f32.mrf.mxu0 }
  0xcb   :  { %v94_v21 = vsel %vm92_vm3, %v87_v17, %v93_v19 }
  0xcc   :  { %v428_v22 = vpop.f32.mrf.mxu0  ;;  %v95_v23 = vpack.c.bf16 %v94_v21, %v94_v21 }
  0xce   :  { %446 = vmatmul.mubr.bf16.vlgmr.msra.gmra.mxu1 %v95_v23 }
 0x18e   :  { %v201_v27 = vpop.f32.mrf.mxu1 }
 0x18f   :  { %v202_v28 = vadd.f32 %v385_v26, %v201_v27 }
 0x190   :  { %v447_v29 = vpop.f32.mrf.mxu1 }
 0x191   :  { %vm207_vm4 = vcmp.gt.f32.partialorder %v202_v28, 0.0  ;;  %v208_v30 = vmul.f32 0.1, %v202_v28 }
 0x192   :  { %v204_v31 = vpop.f32.mrf.mxu1 }
 0x193   :  { %v209_v32 = vsel %vm207_vm4, %v202_v28, %v208_v30 }
 0x194   :  { %v210_v33 = vpack.c.bf16 %v209_v32, %v209_v32  ;;  %v448_v34 = vpop.f32.mrf.mxu1 }
 0x196   :  { %458 = vmatmul.mubr.msk.bf16.vlgmr.msra.gmra.mxu0 %vm250_vm5, %v210_v33 }
 0x197   :  { %465 = vmatprep.mubr.msk.bf16.mxu0 %vm509_vm1, %v508_v2  ;;  %462 = vmatpush3.bf16.msra.mxu0 %v484_v35 }
 0x198   :  { %463 = vmatprep.subr.bf16.mxu0 %v508_v2 }
 0x19b   :  { %464 = vmatpush3.bf16.msra.mxu0 %v485_v36 }
 0x256   :  { %v288_v38 = vpop.f32.mrf.mxu0 }
 0x257   :  { %v289_v39 = vadd.f32 %v394_v37, %v288_v38 }
 0x258   :  { %v459_v40 = vpop.f32.mrf.mxu0 }
 0x259   :  { %vm294_vm6 = vcmp.gt.f32.partialorder %v289_v39, 0.0  ;;  %v295_v41 = vmul.f32 0.1, %v289_v39 }
 0x25a   :  { %v291_v42 = vpop.f32.mrf.mxu0 }
 0x25b   :  { %v296_v43 = vsel %vm294_vm6, %v289_v39, %v295_v41 }
 0x25c   :  { %v297_v44 = vpack.c.bf16 %v296_v43, %v296_v43  ;;  %v460_v45 = vpop.f32.mrf.mxu0 }
 0x25e   :  { %466 = vmatmul.mubr.msk.bf16.vlgmr.msra.gmra.mxu0 %vm321_vm7, %v297_v44 }
 0x31e   :  { %v359_v47 = vpop.f32.mrf.mxu0 }
 0x31f   :  { %v360_v48 = vadd.f32 %v400_v46, %v359_v47 }
 0x320   :  { %v467_v49 = vpop.f32.mrf.mxu0 }
 0x321   :  { %v366_v50 = vmul.f32 0.1, %v360_v48  ;;  %vm365_vm8 = vcmp.gt.f32.partialorder %v360_v48, 0.0 }
 0x322   :  { %v362_v51 = vpop.f32.mrf.mxu0 }
 0x323   :  { %v367_v52 = vsel %vm365_vm8, %v360_v48, %v366_v50 }
 0x324   :  { %v468_v53 = vpop.f32.mrf.mxu0  ;;  %368 = vst [vmem:[#allocation2] sm:$0xff] %v367_v52 }
 0x325   :  { %497 = shalt.err (!%p494_p4)
}
 0x326   :  { %378 = dma.vmem_to_hbm [thread:$0]  %s376_s20, 128, %s656_s9, [#allocation3]  }
 0x327   :  { %506 = dma.done.wait [#allocation3], 128  }
 0x328   :  { %507 = vsyncadd [#allocation3], 4294967168 }
 0x329   :  { %382 = vsyncpa [#allocation3], 1 }

</bundles_post_ra>
